<compile_context>
chip_gen: v6e
topology: v6e:2x2x1
jax: 0.10.0
libtpu: 0.0.40
codegen_flags: <defaults>
</compile_context>

<pallas_src>
import math

import jax
import jax.numpy as jnp
from jax.experimental import pallas as pl
from jax.experimental.pallas import tpu as pltpu


_LANES = 128
_MAX_TN = 4096  # max feature-tile width (elements)


def _normalize_kernel(x_ref, p_ref, o_ref):
    # (x - mean) * (1/std) in f32; p_ref is (2, tn): row 0 = mean, row 1 = 1/std.
    x = x_ref[...].astype(jnp.float32)
    mean = p_ref[0:1, :]
    inv_std = p_ref[1:2, :]
    o_ref[...] = ((x - mean) * inv_std).astype(o_ref.dtype)


def _sublane(dtype):
    # Sublane packing: 8 for f32, 16 for bf16, 32 for int8/fp8.
    return max(8, 32 // jnp.dtype(dtype).itemsize)


def _vmem_numbers():
    # Conservative defaults that fit every generation (v7x: 64 MiB VMEM / TC;
    # v5e's default scoped limit is only 16 MiB so the explicit limit matters).
    budget, limit = 32 * 1024 * 1024, 48 * 1024 * 1024
    try:
        cap = int(getattr(pltpu.get_tpu_info(), "vmem_capacity_bytes", 0))
    except Exception:
        cap = 0
    if cap >= 100 * 1024 * 1024:  # v5e / v6e: 128 MiB per TensorCore
        budget, limit = 48 * 1024 * 1024, 96 * 1024 * 1024
    return budget, limit


def _choose_tiles(Mk, Dk, itemsize, sublane, budget):
    # Feature tile: the largest multiple of 128 lanes dividing Dk, <= _MAX_TN.
    q = Dk // _LANES
    d = 1
    for cand in range(min(q, _MAX_TN // _LANES), 0, -1):
        if q % cand == 0:
            d = cand
            break
    tn = d * _LANES

    # Row tile: as tall as the VMEM budget allows (2 buffers x (in + out) tile),
    # rounded to the dtype's sublane packing. No fixed row cap: the budget is
    # the only binder, so narrow-D / large-M shapes get big blocks.
    max_tm = max(sublane, (budget // (4 * tn * itemsize)) // sublane * sublane)
    mk_rounded = pl.cdiv(Mk, sublane) * sublane
    tm = max(sublane, min(max_tm, mk_rounded))
    if tm >= Mk:
        tm = Mk  # single row block; block dim == full array dim is always legal

    # Megacore fallback: only if the WHOLE grid would be one block, halve the
    # row tile so v7x can shard two blocks across its two TensorCores.
    if (Dk // tn) * pl.cdiv(Mk, tm) == 1 and Mk > sublane:
        tm = max(sublane, pl.cdiv(pl.cdiv(Mk, 2), sublane) * sublane)
    return tm, tn


def _normalize_folded(x2, mean_f, inv_std_f, k, out_dtype):
    # x2: (M_main, D) with M_main % k == 0. Fold k rows into one so the
    # kernel's last dim is a multiple of 128 lanes (lane-dense, unmasked vst).
    M_main, D = x2.shape
    Mk, Dk = M_main // k, k * D
    xk = x2.reshape(Mk, Dk)  # contiguous reshape: free
    params = jnp.stack([jnp.tile(mean_f, k), jnp.tile(inv_std_f, k)])  # (2, Dk) f32

    itemsize = jnp.dtype(out_dtype).itemsize
    sublane = _sublane(out_dtype)
    budget, vmem_limit = _vmem_numbers()
    tm, tn = _choose_tiles(Mk, Dk, itemsize, sublane, budget)

    # Rows are the INNER grid axis: the (2, tn) param block index is constant
    # across the inner sweep so Pallas does not re-DMA it every step. The row
    # axis is ragged (cdiv) and Pallas masks the boundary block, so the
    # wrapper needs no padding and no output slicing.
    grid = (Dk // tn, pl.cdiv(Mk, tm))

    out = pl.pallas_call(
        _normalize_kernel,
        out_shape=jax.ShapeDtypeStruct((Mk, Dk), out_dtype),
        grid_spec=pltpu.PrefetchScalarGridSpec(
            num_scalar_prefetch=0,
            grid=grid,
            in_specs=[
                pl.BlockSpec((tm, tn), lambda j, i: (i, j)),
                pl.BlockSpec((2, tn), lambda j, i: (0, j)),
            ],
            out_specs=pl.BlockSpec((tm, tn), lambda j, i: (i, j)),
        ),
        compiler_params=pltpu.CompilerParams(
            dimension_semantics=("parallel", "parallel"),
            vmem_limit_bytes=vmem_limit,
        ),
        cost_estimate=pl.CostEstimate(
            flops=2 * Mk * Dk,
            bytes_accessed=2 * Mk * Dk * itemsize,
            transcendentals=0,
        ),
    )(xk, params)

    return out.reshape(M_main, D)  # contiguous reshape: free


def normalize1d(x, mean, std):
    """(x - mean) / std with mean/std (length D) broadcast over x's last axis."""
    orig_shape = x.shape
    orig_dtype = x.dtype
    D = orig_shape[-1]

    mean_f = jnp.asarray(mean, dtype=jnp.float32).reshape(D)
    # Precompute the reciprocal once (D elements); the hot loop is sub + mul
    # on the VPU. (No guard against std == 0, same as the PyTorch reference.)
    inv_std_f = 1.0 / jnp.asarray(std, dtype=jnp.float32).reshape(D)

    x2 = x.reshape(-1, D)
    M = x2.shape[0]
    if M == 0:
        return x

    # Fold factor so the folded last dim is a multiple of 128 lanes.
    k = 1 if D % _LANES == 0 else _LANES // math.gcd(D, _LANES)
    r = M % k
    M_main = M - r

    out_main = None
    if M_main > 0:
        x_main = x2 if r == 0 else x2[:M_main]
        out_main = _normalize_folded(x_main, mean_f, inv_std_f, k, orig_dtype)

    if r == 0:
        out2 = out_main
    else:
        # <k (<128) leftover rows: tiny JAX epilogue instead of padding the
        # whole input (a pad would cost a full extra HBM round-trip).
        tail = ((x2[M_main:].astype(jnp.float32) - mean_f) * inv_std_f).astype(orig_dtype)
        out2 = tail if out_main is None else jnp.concatenate([out_main, tail], axis=0)

    return out2.reshape(orig_shape)


if __name__ == "__main__":
    key = jax.random.PRNGKey(0)

    # Primary small example: batch=2, seq=8, features=32 (D%128 != 0 -> fold).
    B, L, D = 2, 8, 32
    x = jax.random.normal(key, (B, L, D), dtype=jnp.float32)
    mean = 0.1 * jnp.arange(D, dtype=jnp.float32)
    std = 1.0 + 0.05 * jnp.arange(D, dtype=jnp.float32)

    y = jax.block_until_ready(normalize1d(x, mean, std))
    y_ref = (x - mean) / std
    assert jnp.allclose(y, y_ref, rtol=1e-5, atol=1e-6), float(jnp.max(jnp.abs(y - y_ref)))

    # Extra check: ragged fold tail (M % k != 0) exercising the JAX epilogue.
    xb = jax.random.normal(jax.random.PRNGKey(1), (3, 5, D), dtype=jnp.float32)
    yb = jax.block_until_ready(normalize1d(xb, mean, std))
    yb_ref = (xb - mean) / std
    assert jnp.allclose(yb, yb_ref, rtol=1e-5, atol=1e-6)

    # Extra check: D already a multiple of 128 with a masked boundary row block.
    D2 = 128
    mean2 = 0.01 * jnp.arange(D2, dtype=jnp.float32)
    std2 = 1.0 + 0.02 * jnp.arange(D2, dtype=jnp.float32)
    xc = jax.random.normal(jax.random.PRNGKey(2), (2, 7, D2), dtype=jnp.float32)
    yc = jax.block_until_ready(normalize1d(xc, mean2, std2))
    yc_ref = (xc - mean2) / std2
    assert jnp.allclose(yc, yc_ref, rtol=1e-5, atol=1e-6)

    print("KERNEL_OK")
</pallas_src>

<mosaic_0001>
module attributes {stable_mosaic.version = 11 : i64} {
  func.func @_normalize_kernel(%arg0: i32, %arg1: i32, %arg2: memref<4x128xf32, #tpu.memory_space<vmem>>, %arg3: memref<2x128xf32, #tpu.memory_space<vmem>>, %arg4: memref<4x128xf32, #tpu.memory_space<vmem>>) attributes {dimension_semantics = [#tpu.dimension_semantics<parallel>, #tpu.dimension_semantics<parallel>], iteration_bounds = array<i64: 1, 1>, scalar_prefetch = 0 : i64, scratch_operands = 0 : i64, tpu.core_type = #tpu.core_type<tc>, window_params = [{transform_indices = @transform_0, window_bounds = array<i64: 4, 128>}, {transform_indices = @transform_1, window_bounds = array<i64: 2, 128>}, {transform_indices = @transform_2, window_bounds = array<i64: 4, 128>}]} {
    %c0 = arith.constant 0 : index
    %c0_0 = arith.constant 0 : index
    %0 = vector.load %arg2[%c0, %c0_0] : memref<4x128xf32, #tpu.memory_space<vmem>>, vector<4x128xf32>
    %c0_1 = arith.constant 0 : index
    %c0_2 = arith.constant 0 : index
    %1 = vector.load %arg3[%c0_1, %c0_2] : memref<2x128xf32, #tpu.memory_space<vmem>>, vector<1x128xf32>
    %c1 = arith.constant 1 : index
    %c0_3 = arith.constant 0 : index
    %2 = vector.load %arg3[%c1, %c0_3] : memref<2x128xf32, #tpu.memory_space<vmem>>, vector<1x128xf32>
    %3 = vector.broadcast %1 : vector<1x128xf32> to vector<4x128xf32>
    %4 = arith.subf %0, %3 : vector<4x128xf32>
    %5 = vector.broadcast %2 : vector<1x128xf32> to vector<4x128xf32>
    %6 = arith.mulf %4, %5 : vector<4x128xf32>
    %c0_4 = arith.constant 0 : index
    %c0_5 = arith.constant 0 : index
    %7 = vector.load %arg4[%c0_4, %c0_5] : memref<4x128xf32, #tpu.memory_space<vmem>>, vector<4x128xf32>
    tpu.vector_store %arg4[%c0_4, %c0_5], %6 {strides = array<i32>} : memref<4x128xf32, #tpu.memory_space<vmem>>, vector<4x128xf32>,
    return
  }
  func.func @transform_0(%arg0: i32, %arg1: i32) -> (i32, i32) {
    %c0_i32 = arith.constant 0 : i32
    return %arg1, %arg0 : i32, i32
  }
  func.func @transform_1(%arg0: i32, %arg1: i32) -> (i32, i32) {
    %c0_i32 = arith.constant 0 : i32
    %c0_i32_0 = arith.constant 0 : i32
    return %c0_i32, %arg0 : i32, i32
  }
  func.func @transform_2(%arg0: i32, %arg1: i32) -> (i32, i32) {
    %c0_i32 = arith.constant 0 : i32
    return %arg1, %arg0 : i32, i32
  }
}

</mosaic_0001>

<bundles_post_ra>
// kernel: tpu_custom_call.1
= control target key start
LH: loop header
LB: loop body
LE: loop exit
PB: predicated region body
PF: predicated region fallthrough
CT: control target
= control target key end

     0   :  { %7 = vsyncpa [#allocation3], 0  ;;  %s164_s0 = inlined_call_operand.hbm [shape: f32[4,128], index: 0, kind: input, shape index: {}]   ;;  %s165_s1 = inlined_call_operand.hbm [shape: f32[2,128], index: 1, kind: input, shape index: {}]   ;;  %s166_s2 = inlined_call_operand.hbm [shape: f32[4,128], index: 2, kind: output, shape index: {}]  }
   0x1   :  { %8 = vsyncpa [#allocation6], 0 }
   0x2   :  { %9 = vsyncpa [#allocation4], 0  ;;  %s137_s9 = smov [#allocation2]   ;;  %s138_s11 = smov [#allocation5]  }
   0x3   :  { %s16_s10 = sshll.u32 %s137_s9, 4  ;;  %s26_s12 = sshll.u32 %s138_s11, 4  ;;  %s17_s10 = int_to_ptr.vmem [resolvable:$true] %s16_s10  ;;  %s27_s12 = int_to_ptr.vmem [resolvable:$true] %s26_s12 }
   0x4   :  { %s79_s13 = scalar_lea.vmem %s17_s10, 64  ;;  %p84_p1 = scmp.lt.s32.totalorder %s17_s10, %s17_s10 }
   0x5   :  { %p80_p0 = scmp.ne.s32.totalorder %s17_s10, %s79_s13  ;;  %p85_p2 = scmp.lt.s32.totalorder %s79_s13, %s79_s13 }
   0x7   :  { %p86_p3 = por %p85_p2, %p84_p1 }
   0x9   :  { %p87_p4 = pnand %p86_p3, %p80_p0 }
   0xb   :  { %90 = shalt.err (!%p87_p4)
}
   0xc   :  { %19 = dma.hbm_to_vmem [thread:$0]  %s164_s0, 64, %s17_s10, [#allocation3]  }
   0xd   :  { %s99_s16 = scalar_lea.vmem %s27_s12, 32  ;;  %p104_p6 = scmp.lt.s32.totalorder %s27_s12, %s27_s12 }
   0xe   :  { %p100_p5 = scmp.ne.s32.totalorder %s27_s12, %s99_s16  ;;  %p105_p7 = scmp.lt.s32.totalorder %s99_s16, %s99_s16 }
  0x10   :  { %p106_p8 = por %p105_p7, %p104_p6 }
  0x12   :  { %p107_p9 = pnand %p106_p8, %p100_p5 }
  0x14   :  { %110 = shalt.err (!%p107_p9)
}
  0x15   :  { %29 = dma.hbm_to_vmem [thread:$0]  %s165_s1, 32, %s27_s12, [#allocation6]  }
  0x16   :  { %131 = dma.done.wait [#allocation3], 64  }
  0x17   :  { %132 = vsyncadd [#allocation3], 4294967232 }
  0x18   :  { %133 = dma.done.wait [#allocation6], 32  }
  0x19   :  { %134 = vsyncadd [#allocation6], 4294967264  ;;  %s139_s19 = smov [#allocation7]   ;;  %v36_v0 = vld [vmem:[#allocation2] sm:$0xf] }
  0x1a   :  { %s56_s20 = sshll.u32 %s139_s19, 4  ;;  %v66_v1 = vld [vmem:[#allocation5] ss:$0 sm:$0xff]  ;;  %v67_v2 = vld [vmem:[#allocation5 + $0x1] ss:$0 sm:$0xff]  ;;  %s57_s20 = int_to_ptr.vmem [resolvable:$true] %s56_s20 }
  0x1b   :  { %v43_v3 = vsub.f32 %v36_v0, %v66_v1  ;;  %s111_s0 = scalar_lea.vmem %s57_s20, 64  ;;  %p116_p11 = scmp.lt.s32.totalorder %s57_s20, %s57_s20 }
  0x1c   :  { %p112_p10 = scmp.ne.s32.totalorder %s57_s20, %s111_s0  ;;  %p117_p12 = scmp.lt.s32.totalorder %s111_s0, %s111_s0 }
  0x1d   :  { %v48_v4 = vmul.f32 %v67_v2, %v43_v3 }
  0x1e   :  { %p118_p13 = por %p117_p12, %p116_p11 }
  0x1f   :  { %49 = vst [vmem:[#allocation7] sm:$0xf] %v48_v4 }
  0x20   :  { %p119_p0 = pnand %p118_p13, %p112_p10 }
  0x22   :  { %122 = shalt.err (!%p119_p0)
}
  0x23   :  { %59 = dma.vmem_to_hbm [thread:$0]  %s57_s20, 64, %s166_s2, [#allocation4]  }
  0x24   :  { %135 = dma.done.wait [#allocation4], 64  }
  0x25   :  { %136 = vsyncadd [#allocation4], 4294967232 }
  0x26   :  { %63 = vsyncpa [#allocation3], 1 }
  0x27   :  { %64 = vsyncpa [#allocation6], 1 }
  0x28   :  { %65 = vsyncpa [#allocation4], 1 }

</bundles_post_ra>
